<compile_context>
chip_gen: v6e
topology: v6e:2x2x1
jax: 0.10.0
libtpu: 0.0.40
codegen_flags: <defaults>
</compile_context>

<pallas_src>
import jax
import jax.numpy as jnp
from jax.experimental import pallas as pl
from jax.experimental.pallas import tpu as pltpu

LANE = 128            # TPU lane width
H1, H2 = 256, 128     # hidden widths fixed by the DQNetwork spec
TM_CAP = 512          # max batch rows per grid step (large-batch amortization)
SMALL_BATCH = 256     # <= this: single grid step, minimal row padding


def _round_up(n, m):
    return (n + m - 1) // m * m


def _tile_batch(B, compute_dtype):
    """Pick (TM, padded_batch).

    Small batches -> one grid step padded only to the sublane packing multiple
    (8 rows f32 / 16 rows bf16) instead of 256.  Large batches -> tiles of up
    to TM_CAP rows and an *even* number of grid steps so v7x's two TensorCores
    (sharded via dimension_semantics=("parallel",)) stay balanced.
    """
    mult = 16 if jnp.dtype(compute_dtype).itemsize == 2 else 8
    if B <= SMALL_BATCH:
        tm = max(_round_up(B, mult), mult)
        return tm, tm
    tm = min(TM_CAP, _round_up(pl.cdiv(B, 2), mult))
    steps = pl.cdiv(B, tm)
    if steps % 2:                       # keep step count even for 2 TCs
        steps += 1
    return tm, steps * tm


def dqn_mlp_kernel(x_ref, w1_ref, b1_ref, w2_ref, b2_ref, w3_ref, b3_ref,
                   o_ref, h1_ref):
    cdt = w1_ref.dtype   # compute dtype (f32 or bf16)

    # Layer 1: cast x on the VPU (free filler), MXU matmul with f32
    # accumulation, bias+ReLU in f32 (safe on v5e: no bf16 VPU), single cast
    # on the store into the compute-dtype scratch.
    x = x_ref[...].astype(cdt)
    h1 = jnp.dot(x, w1_ref[...], preferred_element_type=jnp.float32)
    h1_ref[...] = jnp.maximum(h1 + b1_ref[...], 0.0).astype(cdt)

    # Layer 2: scratch already holds compute dtype -> feeds the MXU directly.
    h2 = jnp.dot(h1_ref[...], w2_ref[...], preferred_element_type=jnp.float32)
    h2 = jnp.maximum(h2 + b2_ref[...], 0.0).astype(cdt)

    # Layer 3: Q-value head (no activation). h2 is consumed straight from
    # registers (no VMEM staging round-trip); the output store is lane-dense
    # (128-wide padded) and unmasked.
    out = jnp.dot(h2, w3_ref[...], preferred_element_type=jnp.float32)
    o_ref[...] = (out + b3_ref[...]).astype(o_ref.dtype)


def dqn_forward(x, params, *, compute_dtype=jnp.float32, out_dtype=None,
                unpad=True):
    """Forward pass of DQNetwork.

    x: [B, input_dim] float32.  params: (in,out) weights / (out,) biases.

    compute_dtype=jnp.bfloat16 halves weight/activation/output HBM traffic and
    is recommended on *every* TPU generation (v5e/v6e/v7x all have bf16-native
    MXUs); accumulation stays f32 and bias+ReLU stay on the f32 VPU path.
    Note bf16 truncates inputs/weights before layer 1, so Q-values differ from
    f32 at the ~1% level.

    out_dtype defaults to compute_dtype (halves output writeback in bf16 mode).
    unpad=False returns the (padded_batch, 128) buffer so the caller can fuse
    the slice with a consumer (e.g. the Q-value argmax) inside its own jit.
    """
    B, input_dim = x.shape
    output_dim = params["w3"].shape[1]
    out_dtype = compute_dtype if out_dtype is None else out_dtype

    out_pad = _round_up(output_dim, LANE)        # 32 -> 128: unmasked vst
    TM, b_pad = _tile_batch(B, compute_dtype)

    # x streams as-is (no lane pad, no external cast); pad batch rows only if
    # the grid needs it.
    xp = x if b_pad == B else jnp.pad(x, ((0, b_pad - B), (0, 0)))

    # Weights/biases are ~200 KB total: cast/pad once outside the kernel.
    # (In a real agent, cache these -- they are reused across forward calls.)
    w1 = params["w1"].astype(compute_dtype)                       # (in, 256)
    w2 = params["w2"].astype(compute_dtype)                       # (256, 128)
    w3 = jnp.zeros((H2, out_pad), compute_dtype).at[:, :output_dim].set(
        params["w3"].astype(compute_dtype))                       # (128, 128)
    b1 = params["b1"].reshape(1, H1).astype(jnp.float32)
    b2 = params["b2"].reshape(1, H2).astype(jnp.float32)
    b3 = jnp.zeros((1, out_pad), jnp.float32).at[0, :output_dim].set(
        params["b3"].astype(jnp.float32))

    grid = (b_pad // TM,)
    const = lambda i: (0, 0)   # constant index_map -> weights stay VMEM-resident
    # NOTE: pipeline_mode=pl.Buffered(1) on the resident specs would also drop
    # their unused second pipeline buffer (~200 KB); omitted as hygiene-only.

    wbytes = jnp.dtype(compute_dtype).itemsize
    cost = pl.CostEstimate(
        flops=2 * b_pad * (input_dim * H1 + H1 * H2 + H2 * out_pad),
        transcendentals=0,
        bytes_accessed=(xp.size * xp.dtype.itemsize
                        + (w1.size + w2.size + w3.size) * wbytes
                        + (b1.size + b2.size + b3.size) * 4
                        + b_pad * out_pad * jnp.dtype(out_dtype).itemsize),
    )

    out = pl.pallas_call(
        dqn_mlp_kernel,
        out_shape=jax.ShapeDtypeStruct((b_pad, out_pad), out_dtype),
        grid_spec=pltpu.PrefetchScalarGridSpec(
            num_scalar_prefetch=0,
            grid=grid,
            in_specs=[
                pl.BlockSpec((TM, input_dim), lambda i: (i, 0)),  # x streams
                pl.BlockSpec((input_dim, H1), const),             # resident
                pl.BlockSpec((1, H1), const),
                pl.BlockSpec((H1, H2), const),
                pl.BlockSpec((1, H2), const),
                pl.BlockSpec((H2, out_pad), const),
                pl.BlockSpec((1, out_pad), const),
            ],
            out_specs=pl.BlockSpec((TM, out_pad), lambda i: (i, 0)),
            scratch_shapes=[
                pltpu.VMEM((TM, H1), compute_dtype),   # h1 staging (compute dt)
            ],
        ),
        compiler_params=pltpu.CompilerParams(
            # shard grid steps over v7x's two TensorCores; harmless elsewhere.
            dimension_semantics=("parallel",),
            # vmem_limit_bytes left at the default: kernel footprint < 3 MiB.
        ),
        cost_estimate=cost,
    )(xp, w1, b1, w2, b2, w3, b3)

    if not unpad:
        return out
    return out[:B, :output_dim]


def init_params(key, input_dim, output_dim):
    """Deterministic init mirroring nn.Linear default (uniform +/- 1/sqrt(fan_in))."""
    dims = [(input_dim, H1), (H1, H2), (H2, output_dim)]
    params = {}
    for i, (fan_in, fan_out) in enumerate(dims, start=1):
        key, kw, kb = jax.random.split(key, 3)
        bound = 1.0 / jnp.sqrt(jnp.float32(fan_in))
        # stored as (in, out) == PyTorch weight.T
        params[f"w{i}"] = jax.random.uniform(
            kw, (fan_in, fan_out), jnp.float32, -bound, bound)
        params[f"b{i}"] = jax.random.uniform(
            kb, (fan_out,), jnp.float32, -bound, bound)
    return params


def dqn_forward_ref(x, params):
    mm = lambda a, b: jnp.dot(a, b, precision=jax.lax.Precision.HIGHEST)
    h1 = jnp.maximum(mm(x, params["w1"]) + params["b1"], 0.0)
    h2 = jnp.maximum(mm(h1, params["w2"]) + params["b2"], 0.0)
    return mm(h2, params["w3"]) + params["b3"]


if __name__ == "__main__":
    key = jax.random.PRNGKey(0)
    key, kx = jax.random.split(key)

    batch = 8
    input_dim = 64      # cribbage state feature vector size (synthetic)
    output_dim = 32     # action space size (synthetic)

    params = init_params(key, input_dim, output_dim)
    x = jax.random.normal(kx, (batch, input_dim), jnp.float32)

    # f32 path, small-batch fast path (TM=8, grid=(1,)): matches the reference.
    out = jax.block_until_ready(dqn_forward(x, params))
    ref = dqn_forward_ref(x, params)
    assert out.shape == (batch, output_dim)
    assert out.dtype == jnp.float32
    assert jnp.allclose(out, ref, atol=1e-3, rtol=1e-3)

    # Larger batch: 2-step grid (even -> both v7x TCs busy), small row remainder pad.
    key, kx2 = jax.random.split(key)
    xb = jax.random.normal(kx2, (600, input_dim), jnp.float32)
    outb = jax.block_until_ready(dqn_forward(xb, params))
    refb = dqn_forward_ref(xb, params)
    assert outb.shape == (600, output_dim)
    assert jnp.allclose(outb, refb, atol=1e-3, rtol=1e-3)

    # bf16 weights/activations/output (f32 MXU accumulation, f32 bias+ReLU);
    # recommended on all generations incl. v5e. Q-values differ at ~1% level.
    out_bf = jax.block_until_ready(
        dqn_forward(xb, params, compute_dtype=jnp.bfloat16))
    assert out_bf.shape == (600, output_dim)
    assert out_bf.dtype == jnp.bfloat16
    assert jnp.allclose(out_bf.astype(jnp.float32), refb, atol=1e-1, rtol=1e-1)

    print("KERNEL_OK")
</pallas_src>

<mosaic_0001>
module attributes {stable_mosaic.version = 11 : i64} {
  func.func @dqn_mlp_kernel(%arg0: i32, %arg1: memref<8x64xf32, #tpu.memory_space<vmem>>, %arg2: memref<64x256xf32, #tpu.memory_space<vmem>>, %arg3: memref<1x256xf32, #tpu.memory_space<vmem>>, %arg4: memref<256x128xf32, #tpu.memory_space<vmem>>, %arg5: memref<1x128xf32, #tpu.memory_space<vmem>>, %arg6: memref<128x128xf32, #tpu.memory_space<vmem>>, %arg7: memref<1x128xf32, #tpu.memory_space<vmem>>, %arg8: memref<8x128xf32, #tpu.memory_space<vmem>>, %arg9: memref<8x256xf32, #tpu.memory_space<vmem>>) attributes {dimension_semantics = [#tpu.dimension_semantics<parallel>], iteration_bounds = array<i64: 1>, scalar_prefetch = 0 : i64, scratch_operands = 1 : i64, tpu.core_type = #tpu.core_type<tc>, window_params = [{transform_indices = @transform_0, window_bounds = array<i64: 8, 64>}, {pipeline_mode = #tpu.pipeline_mode<synchronous>, transform_indices = @transform_1, window_bounds = array<i64: 64, 256>}, {pipeline_mode = #tpu.pipeline_mode<synchronous>, transform_indices = @transform_2, window_bounds = array<i64: 1, 256>}, {pipeline_mode = #tpu.pipeline_mode<synchronous>, transform_indices = @transform_3, window_bounds = array<i64: 256, 128>}, {pipeline_mode = #tpu.pipeline_mode<synchronous>, transform_indices = @transform_4, window_bounds = array<i64: 1, 128>}, {pipeline_mode = #tpu.pipeline_mode<synchronous>, transform_indices = @transform_5, window_bounds = array<i64: 128, 128>}, {pipeline_mode = #tpu.pipeline_mode<synchronous>, transform_indices = @transform_6, window_bounds = array<i64: 1, 128>}, {transform_indices = @transform_7, window_bounds = array<i64: 8, 128>}]} {
    %c0 = arith.constant 0 : index
    %c0_0 = arith.constant 0 : index
    %0 = vector.load %arg1[%c0, %c0_0] : memref<8x64xf32, #tpu.memory_space<vmem>>, vector<8x64xf32>
    %c0_1 = arith.constant 0 : index
    %c0_2 = arith.constant 0 : index
    %1 = vector.load %arg2[%c0_1, %c0_2] : memref<64x256xf32, #tpu.memory_space<vmem>>, vector<64x256xf32>
    %cst = arith.constant dense<0.000000e+00> : vector<8x256xf32>
    %2 = tpu.matmul %0, %1, %cst {dimension_numbers = #tpu.dot_dimension_numbers<[1], [0], [0], [1], [0, 0, 1, 1], [], []>} : vector<8x64xf32>, vector<64x256xf32>, vector<8x256xf32> -> vector<8x256xf32>
    %c0_3 = arith.constant 0 : index
    %c0_4 = arith.constant 0 : index
    %3 = vector.load %arg3[%c0_3, %c0_4] : memref<1x256xf32, #tpu.memory_space<vmem>>, vector<1x256xf32>
    %4 = vector.broadcast %3 : vector<1x256xf32> to vector<8x256xf32>
    %5 = arith.addf %2, %4 : vector<8x256xf32>
    %cst_5 = arith.constant 0.000000e+00 : f32
    %6 = vector.broadcast %cst_5 : f32 to vector<8x256xf32>
    %7 = arith.maximumf %5, %6 : vector<8x256xf32>
    %c0_6 = arith.constant 0 : index
    %c0_7 = arith.constant 0 : index
    %8 = vector.load %arg9[%c0_6, %c0_7] : memref<8x256xf32, #tpu.memory_space<vmem>>, vector<8x256xf32>
    tpu.vector_store %arg9[%c0_6, %c0_7], %7 {strides = array<i32>} : memref<8x256xf32, #tpu.memory_space<vmem>>, vector<8x256xf32>,
    %c0_8 = arith.constant 0 : index
    %c0_9 = arith.constant 0 : index
    %9 = vector.load %arg9[%c0_8, %c0_9] : memref<8x256xf32, #tpu.memory_space<vmem>>, vector<8x256xf32>
    %c0_10 = arith.constant 0 : index
    %c0_11 = arith.constant 0 : index
    %10 = vector.load %arg4[%c0_10, %c0_11] : memref<256x128xf32, #tpu.memory_space<vmem>>, vector<256x128xf32>
    %cst_12 = arith.constant dense<0.000000e+00> : vector<8x128xf32>
    %11 = tpu.matmul %9, %10, %cst_12 {dimension_numbers = #tpu.dot_dimension_numbers<[1], [0], [0], [1], [0, 0, 1, 1], [], []>} : vector<8x256xf32>, vector<256x128xf32>, vector<8x128xf32> -> vector<8x128xf32>
    %c0_13 = arith.constant 0 : index
    %c0_14 = arith.constant 0 : index
    %12 = vector.load %arg5[%c0_13, %c0_14] : memref<1x128xf32, #tpu.memory_space<vmem>>, vector<1x128xf32>
    %13 = vector.broadcast %12 : vector<1x128xf32> to vector<8x128xf32>
    %14 = arith.addf %11, %13 : vector<8x128xf32>
    %cst_15 = arith.constant 0.000000e+00 : f32
    %15 = vector.broadcast %cst_15 : f32 to vector<8x128xf32>
    %16 = arith.maximumf %14, %15 : vector<8x128xf32>
    %c0_16 = arith.constant 0 : index
    %c0_17 = arith.constant 0 : index
    %17 = vector.load %arg6[%c0_16, %c0_17] : memref<128x128xf32, #tpu.memory_space<vmem>>, vector<128x128xf32>
    %cst_18 = arith.constant dense<0.000000e+00> : vector<8x128xf32>
    %18 = tpu.matmul %16, %17, %cst_18 {dimension_numbers = #tpu.dot_dimension_numbers<[1], [0], [0], [1], [0, 0, 1, 1], [], []>} : vector<8x128xf32>, vector<128x128xf32>, vector<8x128xf32> -> vector<8x128xf32>
    %c0_19 = arith.constant 0 : index
    %c0_20 = arith.constant 0 : index
    %19 = vector.load %arg7[%c0_19, %c0_20] : memref<1x128xf32, #tpu.memory_space<vmem>>, vector<1x128xf32>
    %20 = vector.broadcast %19 : vector<1x128xf32> to vector<8x128xf32>
    %21 = arith.addf %18, %20 : vector<8x128xf32>
    %c0_21 = arith.constant 0 : index
    %c0_22 = arith.constant 0 : index
    %22 = vector.load %arg8[%c0_21, %c0_22] : memref<8x128xf32, #tpu.memory_space<vmem>>, vector<8x128xf32>
    tpu.vector_store %arg8[%c0_21, %c0_22], %21 {strides = array<i32>} : memref<8x128xf32, #tpu.memory_space<vmem>>, vector<8x128xf32>,
    return
  }
  func.func @transform_0(%arg0: i32) -> (i32, i32) {
    %c0_i32 = arith.constant 0 : i32
    %c0_i32_0 = arith.constant 0 : i32
    return %arg0, %c0_i32 : i32, i32
  }
  func.func @transform_1(%arg0: i32) -> (i32, i32) {
    %c0_i32 = arith.constant 0 : i32
    %c0_i32_0 = arith.constant 0 : i32
    %c0_i32_1 = arith.constant 0 : i32
    return %c0_i32, %c0_i32_0 : i32, i32
  }
  func.func @transform_2(%arg0: i32) -> (i32, i32) {
    %c0_i32 = arith.constant 0 : i32
    %c0_i32_0 = arith.constant 0 : i32
    %c0_i32_1 = arith.constant 0 : i32
    return %c0_i32, %c0_i32_0 : i32, i32
  }
  func.func @transform_3(%arg0: i32) -> (i32, i32) {
    %c0_i32 = arith.constant 0 : i32
    %c0_i32_0 = arith.constant 0 : i32
    %c0_i32_1 = arith.constant 0 : i32
    return %c0_i32, %c0_i32_0 : i32, i32
  }
  func.func @transform_4(%arg0: i32) -> (i32, i32) {
    %c0_i32 = arith.constant 0 : i32
    %c0_i32_0 = arith.constant 0 : i32
    %c0_i32_1 = arith.constant 0 : i32
    return %c0_i32, %c0_i32_0 : i32, i32
  }
  func.func @transform_5(%arg0: i32) -> (i32, i32) {
    %c0_i32 = arith.constant 0 : i32
    %c0_i32_0 = arith.constant 0 : i32
    %c0_i32_1 = arith.constant 0 : i32
    return %c0_i32, %c0_i32_0 : i32, i32
  }
  func.func @transform_6(%arg0: i32) -> (i32, i32) {
    %c0_i32 = arith.constant 0 : i32
    %c0_i32_0 = arith.constant 0 : i32
    %c0_i32_1 = arith.constant 0 : i32
    return %c0_i32, %c0_i32_0 : i32, i32
  }
  func.func @transform_7(%arg0: i32) -> (i32, i32) {
    %c0_i32 = arith.constant 0 : i32
    %c0_i32_0 = arith.constant 0 : i32
    return %arg0, %c0_i32 : i32, i32
  }
}

</mosaic_0001>

<bundles_post_ra>
// kernel: tpu_custom_call.1
= control target key start
LH: loop header
LB: loop body
LE: loop exit
PB: predicated region body
PF: predicated region fallthrough
CT: control target
= control target key end

     0   :  { %12 = vsyncpa [#allocation4], 0  ;;  %s713_s0 = inlined_call_operand.hbm [shape: f32[8,64], index: 0, kind: input, shape index: {}]   ;;  %s714_s1 = inlined_call_operand.hbm [shape: f32[64,256], index: 1, kind: input, shape index: {}]   ;;  %s715_s2 = inlined_call_operand.vmem [shape: f32[1,256], index: 2, kind: input, shape index: {}]   ;;  %s716_s3 = inlined_call_operand.hbm [shape: f32[256,128], index: 3, kind: input, shape index: {}]   ;;  %s717_s4 = inlined_call_operand.vmem [shape: f32[1,128], index: 4, kind: input, shape index: {}]   ;;  %s718_s5 = inlined_call_operand.hbm [shape: f32[128,128], index: 5, kind: input, shape index: {}]   ;;  %s719_s6 = inlined_call_operand.vmem [shape: f32[1,128], index: 6, kind: input, shape index: {}]   ;;  %s720_s7 = inlined_call_operand.hbm [shape: f32[8,128], index: 7, kind: output, shape index: {}]  }
   0x1   :  { %13 = vsyncpa [#allocation7], 0 }
   0x2   :  { %14 = vsyncpa [#allocation10], 0 }
   0x3   :  { %15 = vsyncpa [#allocation5], 0  ;;  %s620_s24 = smov [#allocation6]  }
   0x4   :  { %s31_s25 = sshll.u32 %s620_s24, 4  ;;  %s32_s25 = int_to_ptr.vmem [resolvable:$true] %s31_s25 }
   0x5   :  { %s520_s26 = scalar_lea.vmem %s32_s25, 2048  ;;  %p525_p1 = scmp.lt.s32.totalorder %s32_s25, %s32_s25 }
   0x6   :  { %p521_p0 = scmp.ne.s32.totalorder %s32_s25, %s520_s26  ;;  %p526_p2 = scmp.lt.s32.totalorder %s520_s26, %s520_s26 }
   0x8   :  { %p527_p3 = por %p526_p2, %p525_p1 }
   0xa   :  { %p528_p4 = pnand %p527_p3, %p521_p0 }
   0xc   :  { %531 = shalt.err (!%p528_p4)
}
   0xd   :  { %s621_s27 = smov 256   ;;  %s622_s28 = smov 16  }
   0xe   :  { %37 = dma.hbm_to_vmem [thread:$0]  %s714_s1, 2048, %s32_s25, [#allocation7], %s621_s27, %s621_s27, %s622_s28  }
   0xf   :  { %s623_s8 = smov [#allocation3]   ;;  %s624_s10 = smov [#allocation8]  }
  0x10   :  { %s22_s9 = sshll.u32 %s623_s8, 4  ;;  %s45_s11 = sshll.u32 %s624_s10, 4  ;;  %s23_s9 = int_to_ptr.vmem [resolvable:$true] %s22_s9  ;;  %s46_s11 = int_to_ptr.vmem [resolvable:$true] %s45_s11 }
  0x11   :  { %s540_s12 = scalar_lea.vmem %s23_s9, 128  ;;  %p545_p6 = scmp.lt.s32.totalorder %s23_s9, %s23_s9 }
  0x12   :  { %p541_p5 = scmp.ne.s32.totalorder %s23_s9, %s540_s12  ;;  %p546_p7 = scmp.lt.s32.totalorder %s540_s12, %s540_s12 }
  0x14   :  { %p547_p8 = por %p546_p7, %p545_p6 }
  0x16   :  { %p548_p9 = pnand %p547_p8, %p541_p5 }
  0x18   :  { %551 = shalt.err (!%p548_p9)
}
  0x19   :  { %25 = dma.hbm_to_vmem [thread:$0]  %s713_s0, 128, %s23_s9, [#allocation4]  }
  0x1a   :  { %s560_s15 = scalar_lea.vmem %s46_s11, 4096  ;;  %p565_p11 = scmp.lt.s32.totalorder %s46_s11, %s46_s11 }
  0x1b   :  { %p561_p10 = scmp.ne.s32.totalorder %s46_s11, %s560_s15  ;;  %p566_p12 = scmp.lt.s32.totalorder %s560_s15, %s560_s15 }
  0x1d   :  { %p567_p13 = por %p566_p12, %p565_p11 }
  0x1f   :  { %p568_p0 = pnand %p567_p13, %p561_p10 }
  0x21   :  { %571 = shalt.err (!%p568_p0)
}
  0x22   :  { %s625_s1 = smov 128   ;;  %s626_s16 = smov 8  }
  0x23   :  { %51 = dma.hbm_to_vmem [thread:$0]  %s716_s3, 4096, %s46_s11, [#allocation7], %s625_s1, %s625_s1, %s626_s16  }
  0x24   :  { %s627_s19 = smov [#allocation9]  }
  0x25   :  { %s59_s20 = sshll.u32 %s627_s19, 4  ;;  %s60_s20 = int_to_ptr.vmem [resolvable:$true] %s59_s20 }
  0x26   :  { %s580_s21 = scalar_lea.vmem %s60_s20, 2048  ;;  %p585_p2 = scmp.lt.s32.totalorder %s60_s20, %s60_s20 }
  0x27   :  { %p581_p1 = scmp.ne.s32.totalorder %s60_s20, %s580_s21  ;;  %p586_p3 = scmp.lt.s32.totalorder %s580_s21, %s580_s21 }
  0x29   :  { %p587_p4 = por %p586_p3, %p585_p2 }
  0x2b   :  { %p588_p5 = pnand %p587_p4, %p581_p1 }
  0x2d   :  { %591 = shalt.err (!%p588_p5)
}
  0x2e   :  { %65 = dma.hbm_to_vmem [thread:$0]  %s718_s5, 2048, %s60_s20, [#allocation10], %s625_s1, %s625_s1, %s626_s16  }
  0x2f   :  { %612 = dma.done.wait [#allocation4], 128  }
  0x30   :  { %613 = vsyncadd [#allocation4], 4294967168 }
  0x31   :  { %614 = dma.done.wait [#allocation7], 6144  }
  0x32   :  { %615 = vsyncadd [#allocation7], 4294961152 }
  0x33   :  { %616 = dma.done.wait [#allocation10], 2048  }
  0x34   :  { %617 = vsyncadd [#allocation10], 4294965248  ;;  %v628_v0 = vmov 0.0   ;;  %v96_v1 = vld [vmem:[#allocation6 + $0x78] sm:$0xff]  ;;  %v95_v2 = vld [vmem:[#allocation6 + $0x70] sm:$0xff]  ;;  %vm109_vm0 = vcmask 523264   ;;  %v99_v61 = vlaneseq }
  0x35   :  { %177 = vmatprep.mubr.f32.mxu0 %v628_v0  ;;  %v94_v3 = vld [vmem:[#allocation6 + $0x68] sm:$0xff]  ;;  %129 = vmatprep.subr.mxu0 %v96_v1  ;;  %v93_v4 = vld [vmem:[#allocation6 + $0x60] sm:$0xff]  ;;  %v92_v5 = vld [vmem:[#allocation6 + $0x58] sm:$0xff]  ;;  %vm629_vm1 = vmmov 0   ;;  %s630_s26 = smov [#allocation11]  }
  0x36   :  { %130 = vmatpush1.msra.mxu0 %v95_v2  ;;  %v91_v6 = vld [vmem:[#allocation6 + $0x50] sm:$0xff]  ;;  %v90_v7 = vld [vmem:[#allocation6 + $0x48] sm:$0xff]  ;;  %v89_v8 = vld [vmem:[#allocation6 + $0x40] sm:$0xff]  ;;  %v100_v62 = vshrl.u32 %v99_v61, 7  ;;  %s400_s27 = sshll.u32 %s630_s26, 4  ;;  %s401_s27 = int_to_ptr.vmem [resolvable:$true] %s400_s27 }
  0x37   :  { %131 = vmatprep.subr.mxu0 %v94_v3  ;;  %v88_v9 = vld [vmem:[#allocation6 + $0x38] sm:$0xff]  ;;  %v220_v12 = vld [vmem:[#allocation8 + $0xf0] sm:$0xff]  ;;  %v219_v15 = vld [vmem:[#allocation8 + $0xe8] sm:$0xff]  ;;  %s592_s28 = scalar_lea.vmem %s401_s27, 128  ;;  %p597_p7 = scmp.lt.s32.totalorder %s401_s27, %s401_s27 }
  0x38   :  { %132 = vmatpush1.msra.mxu0 %v93_v4  ;;  %v221_v10 = vld [vmem:[#allocation8 + $0xf8] sm:$0xff]  ;;  %v204_v13 = vld [vmem:[#allocation8 + $0x70] sm:$0xff]  ;;  %v86_v16 = vld [vmem:[#allocation6 + $0x28] sm:$0xff]  ;;  %v101_v63 = vsub.s32 0, %v100_v62  ;;  %v105_v2 = vsub.s32 1, %v100_v62  ;;  %p593_p6 = scmp.ne.s32.totalorder %s401_s27, %s592_s28  ;;  %p598_p8 = scmp.lt.s32.totalorder %s592_s28, %s592_s28 }
  0x39   :  { %133 = vmatprep.subr.mxu0 %v92_v5  ;;  %414 = vmatprep.subr.mxu1 %v221_v10  ;;  %v205_v11 = vld [vmem:[#allocation8 + $0x78] sm:$0xff]  ;;  %v87_v14 = vld [vmem:[#allocation6 + $0x30] sm:$0xff]  ;;  %v203_v17 = vld [vmem:[#allocation8 + $0x68] sm:$0xff] }
  0x3a   :  { %134 = vmatpush1.msra.mxu0 %v91_v6  ;;  %415 = vmatpush3.msra.mxu1 %v205_v11  ;;  %v85_v18 = vld [vmem:[#allocation6 + $0x20] sm:$0xff]  ;;  %v84_v20 = vld [vmem:[#allocation6 + $0x18] sm:$0xff]  ;;  %v83_v22 = vld [vmem:[#allocation6 + $0x10] sm:$0xff]  ;;  %p599_p9 = por %p598_p8, %p597_p7 }
  0x3b   :  { %135 = vmatprep.subr.mxu0 %v90_v7  ;;  %416 = vmatprep.subr.mxu1 %v220_v12  ;;  %v218_v19 = vld [vmem:[#allocation8 + $0xe0] sm:$0xff]  ;;  %v217_v23 = vld [vmem:[#allocation8 + $0xd8] sm:$0xff]  ;;  %v82_v24 = vld [vmem:[#allocation6 + $0x8] sm:$0xff] }
  0x3c   :  { %136 = vmatpush1.msra.mxu0 %v89_v8  ;;  %417 = vmatpush3.msra.mxu1 %v204_v13  ;;  %v202_v21 = vld [vmem:[#allocation8 + $0x60] sm:$0xff]  ;;  %v201_v25 = vld [vmem:[#allocation8 + $0x58] sm:$0xff]  ;;  %v216_v27 = vld [vmem:[#allocation8 + $0xd0] sm:$0xff]  ;;  %p600_p10 = pnand %p599_p9, %p593_p6 }
  0x3d   :  { %137 = vmatprep.subr.mxu0 %v88_v9  ;;  %418 = vmatprep.subr.mxu1 %v219_v15  ;;  %v81_v26 = vld [vmem:[#allocation6] sm:$0xff]  ;;  %v80_v28 = vld [vmem:[#allocation3] sm:$0xff]  ;;  %v200_v29 = vld [vmem:[#allocation8 + $0x50] sm:$0xff] }
  0x3e   :  { %138 = vmatpush1.msra.mxu0 %v87_v14  ;;  %419 = vmatpush3.msra.mxu1 %v203_v17  ;;  %v215_v30 = vld [vmem:[#allocation8 + $0xc8] sm:$0xff]  ;;  %v214_v32 = vld [vmem:[#allocation8 + $0xc0] sm:$0xff]  ;;  %v213_v34 = vld [vmem:[#allocation8 + $0xb8] sm:$0xff] }
  0x3f   :  { %139 = vmatprep.subr.mxu0 %v86_v16  ;;  %420 = vmatprep.subr.mxu1 %v218_v19  ;;  %v199_v31 = vld [vmem:[#allocation8 + $0x48] sm:$0xff]  ;;  %v198_v33 = vld [vmem:[#allocation8 + $0x40] sm:$0xff]  ;;  %v197_v35 = vld [vmem:[#allocation8 + $0x38] sm:$0xff] }
  0x40   :  { %140 = vmatpush1.msra.mxu0 %v85_v18  ;;  %421 = vmatpush3.msra.mxu1 %v202_v21  ;;  %v212_v36 = vld [vmem:[#allocation8 + $0xb0] sm:$0xff]  ;;  %v211_v38 = vld [vmem:[#allocation8 + $0xa8] sm:$0xff]  ;;  %v210_v40 = vld [vmem:[#allocation8 + $0xa0] sm:$0xff] }
  0x41   :  { %141 = vmatprep.subr.mxu0 %v84_v20  ;;  %422 = vmatprep.subr.mxu1 %v217_v23  ;;  %v196_v37 = vld [vmem:[#allocation8 + $0x30] sm:$0xff]  ;;  %v195_v39 = vld [vmem:[#allocation8 + $0x28] sm:$0xff]  ;;  %v194_v41 = vld [vmem:[#allocation8 + $0x20] sm:$0xff] }
  0x42   :  { %142 = vmatpush1.msra.mxu0 %v83_v22  ;;  %423 = vmatpush3.msra.mxu1 %v201_v25  ;;  %v209_v42 = vld [vmem:[#allocation8 + $0x98] sm:$0xff]  ;;  %v208_v44 = vld [vmem:[#allocation8 + $0x90] sm:$0xff]  ;;  %v207_v46 = vld [vmem:[#allocation8 + $0x88] sm:$0xff] }
  0x43   :  { %143 = vmatprep.subr.mxu0 %v82_v24  ;;  %424 = vmatprep.subr.mxu1 %v216_v27  ;;  %v193_v43 = vld [vmem:[#allocation8 + $0x18] sm:$0xff]  ;;  %v192_v45 = vld [vmem:[#allocation8 + $0x10] sm:$0xff]  ;;  %v191_v47 = vld [vmem:[#allocation8 + $0x8] sm:$0xff] }
  0x44   :  { %144 = vmatpush1.msra.mxu0 %v81_v26  ;;  %425 = vmatpush3.msra.mxu1 %v200_v29  ;;  %v206_v48 = vld [vmem:[#allocation8 + $0x80] sm:$0xff]  ;;  %v315_v50 = vld [vmem:[#allocation9 + $0x78] sm:$0xff]  ;;  %v314_v51 = vld [vmem:[#allocation9 + $0x70] sm:$0xff] }
  0x45   :  { %411 = vmatmul.mubr.msk.f32.vlgmr.msra.gmra.mxu0 %vm109_vm0, %v80_v28  ;;  %426 = vmatprep.subr.mxu1 %v215_v30  ;;  %v190_v49 = vld [vmem:[#allocation8] sm:$0xff]  ;;  %v313_v52 = vld [vmem:[#allocation9 + $0x68] sm:$0xff]  ;;  %v311_v54 = vld [vmem:[#allocation9 + $0x58] sm:$0xff] }
  0x46   :  { %466 = vmatprep.subr.mxu0 %v628_v0  ;;  %427 = vmatpush3.msra.mxu1 %v199_v31  ;;  %v312_v53 = vld [vmem:[#allocation9 + $0x60] sm:$0xff]  ;;  %v310_v55 = vld [vmem:[#allocation9 + $0x50] sm:$0xff]  ;;  %v309_v56 = vld [vmem:[#allocation9 + $0x48] sm:$0xff] }
  0x47   :  { %428 = vmatprep.subr.mxu1 %v214_v32  ;;  %467 = vmatpush3.msra.mxu0 %v315_v50  ;;  %v308_v57 = vld [vmem:[#allocation9 + $0x40] sm:$0xff]  ;;  %v307_v58 = vld [vmem:[#allocation9 + $0x38] sm:$0xff]  ;;  %v306_v59 = vld [vmem:[#allocation9 + $0x30] sm:$0xff] }
  0x48   :  { %429 = vmatpush3.msra.mxu1 %v198_v33  ;;  %468 = vmatprep.subr.mxu0 %v628_v0  ;;  %v305_v60 = vld [vmem:[#allocation9 + $0x28] sm:$0xff]  ;;  %v97_v1 = vld [vmem:[%s715_s2] sm:$0x3]  ;;  %v304_v11 = vld [vmem:[#allocation9 + $0x20] sm:$0xff] }
  0x49   :  { %430 = vmatprep.subr.mxu1 %v213_v34  ;;  %469 = vmatpush3.msra.mxu0 %v314_v51  ;;  %v102_v3 = vrot.slane %v97_v1, %v101_v63  ;;  %v106_v4 = vrot.slane %v97_v1, %v105_v2  ;;  %v303_v12 = vld [vmem:[#allocation9 + $0x18] sm:$0xff]  ;;  %v302_v13 = vld [vmem:[#allocation9 + $0x10] sm:$0xff]  ;;  %v301_v14 = vld [vmem:[#allocation9 + $0x8] sm:$0xff] }
  0x4a   :  { %431 = vmatpush3.msra.mxu1 %v197_v35  ;;  %470 = vmatprep.subr.mxu0 %v628_v0  ;;  %v300_v15 = vld [vmem:[#allocation9] sm:$0xff]  ;;  %v412_v17 = vld [vmem:[%s717_s4] ss:$0 sm:$0xff] }
  0x4b   :  { %432 = vmatprep.subr.mxu1 %v212_v36  ;;  %471 = vmatpush3.msra.mxu0 %v313_v52  ;;  %v413_v22 = vld [vmem:[%s719_s6] ss:$0 sm:$0xff] }
  0x4c   :  { %433 = vmatpush3.msra.mxu1 %v196_v37  ;;  %472 = vmatprep.subr.mxu0 %v628_v0 }
  0x4d   :  { %434 = vmatprep.subr.mxu1 %v211_v38  ;;  %473 = vmatpush3.msra.mxu0 %v312_v53 }
  0x4e   :  { %435 = vmatpush3.msra.mxu1 %v195_v39  ;;  %474 = vmatprep.subr.mxu0 %v628_v0 }
  0x4f   :  { %436 = vmatprep.subr.mxu1 %v210_v40  ;;  %475 = vmatpush3.msra.mxu0 %v311_v54 }
  0x50   :  { %437 = vmatpush3.msra.mxu1 %v194_v41  ;;  %476 = vmatprep.subr.mxu0 %v628_v0 }
  0x51   :  { %438 = vmatprep.subr.mxu1 %v209_v42  ;;  %477 = vmatpush3.msra.mxu0 %v310_v55 }
  0x52   :  { %439 = vmatpush3.msra.mxu1 %v193_v43  ;;  %478 = vmatprep.subr.mxu0 %v628_v0 }
  0x53   :  { %440 = vmatprep.subr.mxu1 %v208_v44  ;;  %479 = vmatpush3.msra.mxu0 %v309_v56 }
  0x54   :  { %441 = vmatpush3.msra.mxu1 %v192_v45  ;;  %480 = vmatprep.subr.mxu0 %v628_v0 }
  0x55   :  { %442 = vmatprep.subr.mxu1 %v207_v46  ;;  %481 = vmatpush3.msra.mxu0 %v308_v57 }
  0x56   :  { %443 = vmatpush3.msra.mxu1 %v191_v47  ;;  %482 = vmatprep.subr.mxu0 %v628_v0 }
  0x57   :  { %444 = vmatprep.subr.mxu1 %v206_v48  ;;  %483 = vmatpush3.msra.mxu0 %v307_v58 }
  0x58   :  { %445 = vmatpush3.msra.mxu1 %v190_v49  ;;  %484 = vmatprep.subr.mxu0 %v628_v0 }
  0x59   :  { %485 = vmatpush3.msra.mxu0 %v306_v59  ;;  %498 = vmatprep.mubr.msk.f32.mxu0 %vm629_vm1, %v628_v0 }
  0x5a   :  { %486 = vmatprep.subr.mxu0 %v628_v0 }
  0x5b   :  { %487 = vmatpush3.msra.mxu0 %v305_v60 }
  0x5c   :  { %488 = vmatprep.subr.mxu0 %v628_v0 }
  0x5d   :  { %489 = vmatpush3.msra.mxu0 %v304_v11 }
  0x5e   :  { %490 = vmatprep.subr.mxu0 %v628_v0 }
  0x5f   :  { %491 = vmatpush3.msra.mxu0 %v303_v12 }
  0x60   :  { %492 = vmatprep.subr.mxu0 %v628_v0 }
  0x61   :  { %493 = vmatpush3.msra.mxu0 %v302_v13 }
  0x62   :  { %494 = vmatprep.subr.mxu0 %v628_v0 }
  0x63   :  { %495 = vmatpush3.msra.mxu0 %v301_v14 }
  0x64   :  { %496 = vmatprep.subr.mxu0 %v628_v0 }
  0x65   :  { %497 = vmatpush3.msra.mxu0 %v300_v15 }
 0x105   :  { %v179_v5 = vpop.f32.mrf.mxu0 }
 0x106   :  { %v180_v6 = vadd.f32 %v179_v5, %v102_v3 }
 0x107   :  { %v181_v7 = vpop.f32.mrf.mxu0 }
 0x108   :  { %v182_v8 = vadd.f32 %v181_v7, %v106_v4  ;;  %v184_v10 = vmax.f32 %v180_v6, 0.0 }
 0x10a   :  { %v185_v9 = vmax.f32 %v182_v8, 0.0 }
 0x10c   :  { %293 = vmatprep.mubr.f32.mxu1 %v185_v9 }
 0x10d   :  { %294 = vmatmul.mubr.f32.vlgmr.msra.gmra.mxu1 %v184_v10 }
 0x1cd   :  { %v446_v16 = vpop.f32.mrf.mxu1 }
 0x1cf   :  { %v447_v18 = vpop.f32.mrf.mxu1 }
 0x1d0   :  { %v448_v19 = vadd.f32 %v447_v18, %v446_v16 }
 0x1d2   :  { %v296_v20 = vadd.f32 %v448_v19, %v412_v17 }
 0x1d4   :  { %v299_v21 = vmax.f32 %v296_v20, 0.0 }
 0x1d6   :  { %499 = vmatmul.mubr.f32.vlgmr.msra.gmra.mxu0 %v299_v21 }
 0x296   :  { %v389_v23 = vpop.f32.mrf.mxu0 }
 0x297   :  { %v390_v24 = vadd.f32 %v413_v22, %v389_v23 }
 0x298   :  { %v500_v0 = vpop.f32.mrf.mxu0 }
 0x299   :  { %393 = vst [vmem:[#allocation11] sm:$0xff] %v390_v24 }
 0x29a   :  { %603 = shalt.err (!%p600_p10)
}
 0x29b   :  { %403 = dma.vmem_to_hbm [thread:$0]  %s401_s27, 128, %s720_s7, [#allocation5]  }
 0x29c   :  { %618 = dma.done.wait [#allocation5], 128  }
 0x29d   :  { %619 = vsyncadd [#allocation5], 4294967168 }
 0x29e   :  { %407 = vsyncpa [#allocation4], 1 }
 0x29f   :  { %408 = vsyncpa [#allocation7], 1 }
 0x2a0   :  { %409 = vsyncpa [#allocation10], 1 }
 0x2a1   :  { %410 = vsyncpa [#allocation5], 1 }

</bundles_post_ra>
